<compile_context>
chip_gen: v7x
topology: tpu7x:2x2x1
jax: 0.10.0
libtpu: 0.0.40
codegen_flags: <defaults>
</compile_context>

<pallas_src>
import jax
import jax.numpy as jnp
from jax.experimental import pallas as pl
from jax.experimental.pallas import tpu as pltpu

IN_DIM = 147
HIDDEN_DIMS = [256, 128, 64]
OUT_DIM = 1
LEAKY_SLOPE = 0.2
BN_EPS = 1e-5


def _round_up(v, m):
    return ((v + m - 1) // m) * m


def mlp_kernel(x_ref,
               w1_ref, b1_ref,
               w2_ref, b2_ref,
               w3_ref, b3_ref,
               wo_ref, bo_ref,
               out_ref):
    """Fused MLP forward: 3x (bf16 matmul + folded bias + LeakyReLU) + 64->1 output matmul."""

    def block(h, w_ref, b_ref):
        y = jnp.dot(h, w_ref[...], preferred_element_type=jnp.float32)   # MXU, f32 accum
        y = y + b_ref[...]                          # Linear bias + BN affine, pre-folded (f32)
        y = jnp.where(y > 0, y, LEAKY_SLOPE * y)    # LeakyReLU(0.2) in f32; Dropout = identity (eval)
        return y.astype(jnp.bfloat16)

    x = x_ref[...].astype(jnp.bfloat16)             # f32 -> bf16 cast in-kernel (no wrapper pass)
    h = block(x, w1_ref, b1_ref)                    # (tile,147) @ (147,256); Mosaic pads K internally
    h = block(h, w2_ref, b2_ref)                    # 256 -> 128
    h = block(h, w3_ref, b3_ref)                    # 128 -> 64
    out = jnp.dot(h, wo_ref[...], preferred_element_type=jnp.float32) + bo_ref[...]
    out_ref[...] = out.astype(out_ref.dtype)        # (tile, 1) f32 store — no padded output slab


def kaiming_normal_fan_out(key, out_dim, in_dim):
    # nn.init.kaiming_normal_(w, mode='fan_out', nonlinearity='leaky_relu') with default a=0
    # -> gain = sqrt(2).  PyTorch Linear weight is (out, in); we store the transpose (in, out).
    gain = 2.0 ** 0.5
    std = gain / (out_dim ** 0.5)
    w = std * jax.random.normal(key, (out_dim, in_dim), dtype=jnp.float32)
    return w.T


def init_params(key):
    """Returns folded params: [w1,b1, w2,b2, w3,b3, wo,bo] (weights bf16, biases f32)."""
    dims = [IN_DIM] + HIDDEN_DIMS
    keys = jax.random.split(key, len(HIDDEN_DIMS) + 1)
    params = []
    for i, (din, dout) in enumerate(zip(dims[:-1], dims[1:])):
        w = kaiming_normal_fan_out(keys[i], dout, din)         # (din, dout) f32
        b = jnp.zeros((1, dout), jnp.float32)                  # nn.init.constant_(bias, 0)
        # BatchNorm1d defaults (eval): gamma=1, beta=0, running_mean=0, running_var=1
        gamma = jnp.ones((1, dout), jnp.float32)
        beta = jnp.zeros((1, dout), jnp.float32)
        rmean = jnp.zeros((1, dout), jnp.float32)
        rvar = jnp.ones((1, dout), jnp.float32)
        scale = gamma / jnp.sqrt(rvar + BN_EPS)
        shift = beta - rmean * scale
        w_f = (w * scale).astype(jnp.bfloat16)                 # fold BN scale into weight cols
        b_f = (b * scale + shift).astype(jnp.float32)          # fold bias + BN shift
        params += [w_f, b_f]
    wo = kaiming_normal_fan_out(keys[-1], OUT_DIM, HIDDEN_DIMS[-1])   # (64, 1)
    bo = jnp.zeros((1, OUT_DIM), jnp.float32)
    params += [wo.astype(jnp.bfloat16), bo]
    return params


def _choose_batch_tile(B):
    if B <= 256:
        # Single block (no per-step pipeline overhead); round to 16 rows for bf16 sublane packing.
        return max(16, _round_up(B, 16))
    # >= 2 grid steps so both v7x TensorCores get work; tiles up to 1024 rows amortize the
    # ~0.35 us per-step cost while staying far below the scoped-VMEM default.
    return min(1024, _round_up(-(-B // 2), 256))


def improved_discriminator_forward(x, params):
    B, F = x.shape
    assert F == IN_DIM
    batch_tile = _choose_batch_tile(B)
    Bp = _round_up(B, batch_tile)
    # Row-only pad (no dtype change), and only when B is not already a tile multiple.
    xin = x if Bp == B else jnp.pad(x, ((0, Bp - B), (0, 0)))

    grid = (Bp // batch_tile,)
    in_specs = [pl.BlockSpec((batch_tile, IN_DIM), lambda i: (i, 0))]
    # Params are small, grid-invariant, full-array blocks resident in VMEM.
    in_specs += [pl.BlockSpec(p.shape, lambda i: (0, 0)) for p in params]

    flops = 2 * Bp * (IN_DIM * HIDDEN_DIMS[0]
                      + HIDDEN_DIMS[0] * HIDDEN_DIMS[1]
                      + HIDDEN_DIMS[1] * HIDDEN_DIMS[2]
                      + HIDDEN_DIMS[2] * OUT_DIM)
    param_bytes = sum(int(p.size) * p.dtype.itemsize for p in params)
    bytes_accessed = Bp * (IN_DIM * 4 + OUT_DIM * 4) + param_bytes

    out = pl.pallas_call(
        mlp_kernel,
        out_shape=jax.ShapeDtypeStruct((Bp, OUT_DIM), jnp.float32),
        grid=grid,
        in_specs=in_specs,
        out_specs=pl.BlockSpec((batch_tile, OUT_DIM), lambda i: (i, 0)),
        compiler_params=pltpu.CompilerParams(
            dimension_semantics=("parallel",)),
        cost_estimate=pl.CostEstimate(flops=flops, transcendentals=0,
                                      bytes_accessed=bytes_accessed),
    )(xin, *params)
    return out if Bp == B else out[:B]


def reference_forward(x, params):
    """Pure-JAX reference mirroring the kernel math and the PyTorch module structure.

    Residual adds only occur inside the hidden-block loop when shapes match; with
    hidden_dims=[256,128,64] they never match, so no residual is added (same as PyTorch).
    """
    h = x.astype(jnp.bfloat16)
    for i in range(3):
        w, b = params[2 * i], params[2 * i + 1]
        y = jnp.dot(h, w, preferred_element_type=jnp.float32) + b
        y = jnp.where(y > 0, y, LEAKY_SLOPE * y)
        h = y.astype(jnp.bfloat16)
    wo, bo = params[-2:]
    return jnp.dot(h, wo, preferred_element_type=jnp.float32) + bo


if __name__ == "__main__":
    key = jax.random.PRNGKey(0)
    k_x, k_p = jax.random.split(key)
    batch = 16
    x = jax.random.normal(k_x, (batch, IN_DIM), dtype=jnp.float32)
    params = init_params(k_p)

    out = improved_discriminator_forward(x, params)
    out = jax.block_until_ready(out)

    ref = reference_forward(x, params)
    assert out.shape == (batch, OUT_DIM)
    assert jnp.allclose(out, ref, atol=2e-3, rtol=2e-3), (
        f"max abs err = {jnp.max(jnp.abs(out - ref))}")
    print("KERNEL_OK")
</pallas_src>

<mosaic_0001>
module attributes {stable_mosaic.version = 11 : i64} {
  func.func @mlp_kernel(%arg0: i32, %arg1: memref<16x147xf32, #tpu.memory_space<vmem>>, %arg2: memref<147x256xbf16, #tpu.memory_space<vmem>>, %arg3: memref<1x256xf32, #tpu.memory_space<vmem>>, %arg4: memref<256x128xbf16, #tpu.memory_space<vmem>>, %arg5: memref<1x128xf32, #tpu.memory_space<vmem>>, %arg6: memref<128x64xbf16, #tpu.memory_space<vmem>>, %arg7: memref<1x64xf32, #tpu.memory_space<vmem>>, %arg8: memref<64x1xbf16, #tpu.memory_space<vmem>>, %arg9: memref<1x1xf32, #tpu.memory_space<vmem>>, %arg10: memref<16x1xf32, #tpu.memory_space<vmem>>) attributes {dimension_semantics = [#tpu.dimension_semantics<parallel>], iteration_bounds = array<i64: 1>, scalar_prefetch = 0 : i64, scratch_operands = 0 : i64, tpu.core_type = #tpu.core_type<tc>, window_params = [{transform_indices = @transform_0, window_bounds = array<i64: 16, 147>}, {pipeline_mode = #tpu.pipeline_mode<synchronous>, transform_indices = @transform_1, window_bounds = array<i64: 147, 256>}, {pipeline_mode = #tpu.pipeline_mode<synchronous>, transform_indices = @transform_2, window_bounds = array<i64: 1, 256>}, {pipeline_mode = #tpu.pipeline_mode<synchronous>, transform_indices = @transform_3, window_bounds = array<i64: 256, 128>}, {pipeline_mode = #tpu.pipeline_mode<synchronous>, transform_indices = @transform_4, window_bounds = array<i64: 1, 128>}, {pipeline_mode = #tpu.pipeline_mode<synchronous>, transform_indices = @transform_5, window_bounds = array<i64: 128, 64>}, {pipeline_mode = #tpu.pipeline_mode<synchronous>, transform_indices = @transform_6, window_bounds = array<i64: 1, 64>}, {pipeline_mode = #tpu.pipeline_mode<synchronous>, transform_indices = @transform_7, window_bounds = array<i64: 64, 1>}, {pipeline_mode = #tpu.pipeline_mode<synchronous>, transform_indices = @transform_8, window_bounds = array<i64: 1, 1>}, {transform_indices = @transform_9, window_bounds = array<i64: 16, 1>}]} {
    %c0 = arith.constant 0 : index
    %c0_0 = arith.constant 0 : index
    %0 = vector.load %arg1[%c0, %c0_0] : memref<16x147xf32, #tpu.memory_space<vmem>>, vector<16x147xf32>
    %1 = arith.truncf %0 : vector<16x147xf32> to vector<16x147xbf16>
    %c0_1 = arith.constant 0 : index
    %c0_2 = arith.constant 0 : index
    %2 = vector.load %arg2[%c0_1, %c0_2] : memref<147x256xbf16, #tpu.memory_space<vmem>>, vector<147x256xbf16>
    %cst = arith.constant dense<0.000000e+00> : vector<16x256xf32>
    %3 = tpu.matmul %1, %2, %cst {dimension_numbers = #tpu.dot_dimension_numbers<[1], [0], [0], [1], [0, 0, 1, 1], [], []>} : vector<16x147xbf16>, vector<147x256xbf16>, vector<16x256xf32> -> vector<16x256xf32>
    %c0_3 = arith.constant 0 : index
    %c0_4 = arith.constant 0 : index
    %4 = vector.load %arg3[%c0_3, %c0_4] : memref<1x256xf32, #tpu.memory_space<vmem>>, vector<1x256xf32>
    %5 = vector.broadcast %4 : vector<1x256xf32> to vector<16x256xf32>
    %6 = arith.addf %3, %5 : vector<16x256xf32>
    %cst_5 = arith.constant 0.000000e+00 : f32
    %7 = vector.broadcast %cst_5 : f32 to vector<16x256xf32>
    %8 = arith.cmpf ogt, %6, %7 : vector<16x256xf32>
    %cst_6 = arith.constant 2.000000e-01 : f32
    %9 = vector.broadcast %cst_6 : f32 to vector<16x256xf32>
    %10 = arith.mulf %9, %6 : vector<16x256xf32>
    %11 = arith.select %8, %6, %10 : vector<16x256xi1>, vector<16x256xf32>
    %12 = arith.truncf %11 : vector<16x256xf32> to vector<16x256xbf16>
    %c0_7 = arith.constant 0 : index
    %c0_8 = arith.constant 0 : index
    %13 = vector.load %arg4[%c0_7, %c0_8] : memref<256x128xbf16, #tpu.memory_space<vmem>>, vector<256x128xbf16>
    %cst_9 = arith.constant dense<0.000000e+00> : vector<16x128xf32>
    %14 = tpu.matmul %12, %13, %cst_9 {dimension_numbers = #tpu.dot_dimension_numbers<[1], [0], [0], [1], [0, 0, 1, 1], [], []>} : vector<16x256xbf16>, vector<256x128xbf16>, vector<16x128xf32> -> vector<16x128xf32>
    %c0_10 = arith.constant 0 : index
    %c0_11 = arith.constant 0 : index
    %15 = vector.load %arg5[%c0_10, %c0_11] : memref<1x128xf32, #tpu.memory_space<vmem>>, vector<1x128xf32>
    %16 = vector.broadcast %15 : vector<1x128xf32> to vector<16x128xf32>
    %17 = arith.addf %14, %16 : vector<16x128xf32>
    %cst_12 = arith.constant 0.000000e+00 : f32
    %18 = vector.broadcast %cst_12 : f32 to vector<16x128xf32>
    %19 = arith.cmpf ogt, %17, %18 : vector<16x128xf32>
    %cst_13 = arith.constant 2.000000e-01 : f32
    %20 = vector.broadcast %cst_13 : f32 to vector<16x128xf32>
    %21 = arith.mulf %20, %17 : vector<16x128xf32>
    %22 = arith.select %19, %17, %21 : vector<16x128xi1>, vector<16x128xf32>
    %23 = arith.truncf %22 : vector<16x128xf32> to vector<16x128xbf16>
    %c0_14 = arith.constant 0 : index
    %c0_15 = arith.constant 0 : index
    %24 = vector.load %arg6[%c0_14, %c0_15] : memref<128x64xbf16, #tpu.memory_space<vmem>>, vector<128x64xbf16>
    %cst_16 = arith.constant dense<0.000000e+00> : vector<16x64xf32>
    %25 = tpu.matmul %23, %24, %cst_16 {dimension_numbers = #tpu.dot_dimension_numbers<[1], [0], [0], [1], [0, 0, 1, 1], [], []>} : vector<16x128xbf16>, vector<128x64xbf16>, vector<16x64xf32> -> vector<16x64xf32>
    %c0_17 = arith.constant 0 : index
    %c0_18 = arith.constant 0 : index
    %26 = vector.load %arg7[%c0_17, %c0_18] : memref<1x64xf32, #tpu.memory_space<vmem>>, vector<1x64xf32>
    %27 = vector.broadcast %26 : vector<1x64xf32> to vector<16x64xf32>
    %28 = arith.addf %25, %27 : vector<16x64xf32>
    %cst_19 = arith.constant 0.000000e+00 : f32
    %29 = vector.broadcast %cst_19 : f32 to vector<16x64xf32>
    %30 = arith.cmpf ogt, %28, %29 : vector<16x64xf32>
    %cst_20 = arith.constant 2.000000e-01 : f32
    %31 = vector.broadcast %cst_20 : f32 to vector<16x64xf32>
    %32 = arith.mulf %31, %28 : vector<16x64xf32>
    %33 = arith.select %30, %28, %32 : vector<16x64xi1>, vector<16x64xf32>
    %34 = arith.truncf %33 : vector<16x64xf32> to vector<16x64xbf16>
    %c0_21 = arith.constant 0 : index
    %c0_22 = arith.constant 0 : index
    %35 = vector.load %arg8[%c0_21, %c0_22] : memref<64x1xbf16, #tpu.memory_space<vmem>>, vector<64x1xbf16>
    %cst_23 = arith.constant dense<0.000000e+00> : vector<16x1xf32>
    %36 = tpu.matmul %34, %35, %cst_23 {dimension_numbers = #tpu.dot_dimension_numbers<[1], [0], [0], [1], [0, 0, 1, 1], [], []>} : vector<16x64xbf16>, vector<64x1xbf16>, vector<16x1xf32> -> vector<16x1xf32>
    %c0_24 = arith.constant 0 : index
    %c0_25 = arith.constant 0 : index
    %37 = vector.load %arg9[%c0_24, %c0_25] : memref<1x1xf32, #tpu.memory_space<vmem>>, vector<1x1xf32>
    %38 = vector.broadcast %37 : vector<1x1xf32> to vector<16x1xf32>
    %39 = arith.addf %36, %38 : vector<16x1xf32>
    %c0_26 = arith.constant 0 : index
    %c0_27 = arith.constant 0 : index
    %40 = vector.load %arg10[%c0_26, %c0_27] : memref<16x1xf32, #tpu.memory_space<vmem>>, vector<16x1xf32>
    tpu.vector_store %arg10[%c0_26, %c0_27], %39 {strides = array<i32>} : memref<16x1xf32, #tpu.memory_space<vmem>>, vector<16x1xf32>,
    return
  }
  func.func @transform_0(%arg0: i32) -> (i32, i32) {
    %c0_i32 = arith.constant 0 : i32
    %c0_i32_0 = arith.constant 0 : i32
    return %arg0, %c0_i32 : i32, i32
  }
  func.func @transform_1(%arg0: i32) -> (i32, i32) {
    %c0_i32 = arith.constant 0 : i32
    %c0_i32_0 = arith.constant 0 : i32
    %c0_i32_1 = arith.constant 0 : i32
    return %c0_i32, %c0_i32_0 : i32, i32
  }
  func.func @transform_2(%arg0: i32) -> (i32, i32) {
    %c0_i32 = arith.constant 0 : i32
    %c0_i32_0 = arith.constant 0 : i32
    %c0_i32_1 = arith.constant 0 : i32
    return %c0_i32, %c0_i32_0 : i32, i32
  }
  func.func @transform_3(%arg0: i32) -> (i32, i32) {
    %c0_i32 = arith.constant 0 : i32
    %c0_i32_0 = arith.constant 0 : i32
    %c0_i32_1 = arith.constant 0 : i32
    return %c0_i32, %c0_i32_0 : i32, i32
  }
  func.func @transform_4(%arg0: i32) -> (i32, i32) {
    %c0_i32 = arith.constant 0 : i32
    %c0_i32_0 = arith.constant 0 : i32
    %c0_i32_1 = arith.constant 0 : i32
    return %c0_i32, %c0_i32_0 : i32, i32
  }
  func.func @transform_5(%arg0: i32) -> (i32, i32) {
    %c0_i32 = arith.constant 0 : i32
    %c0_i32_0 = arith.constant 0 : i32
    %c0_i32_1 = arith.constant 0 : i32
    return %c0_i32, %c0_i32_0 : i32, i32
  }
  func.func @transform_6(%arg0: i32) -> (i32, i32) {
    %c0_i32 = arith.constant 0 : i32
    %c0_i32_0 = arith.constant 0 : i32
    %c0_i32_1 = arith.constant 0 : i32
    return %c0_i32, %c0_i32_0 : i32, i32
  }
  func.func @transform_7(%arg0: i32) -> (i32, i32) {
    %c0_i32 = arith.constant 0 : i32
    %c0_i32_0 = arith.constant 0 : i32
    %c0_i32_1 = arith.constant 0 : i32
    return %c0_i32, %c0_i32_0 : i32, i32
  }
  func.func @transform_8(%arg0: i32) -> (i32, i32) {
    %c0_i32 = arith.constant 0 : i32
    %c0_i32_0 = arith.constant 0 : i32
    %c0_i32_1 = arith.constant 0 : i32
    return %c0_i32, %c0_i32_0 : i32, i32
  }
  func.func @transform_9(%arg0: i32) -> (i32, i32) {
    %c0_i32 = arith.constant 0 : i32
    %c0_i32_0 = arith.constant 0 : i32
    return %arg0, %c0_i32 : i32, i32
  }
}

</mosaic_0001>

<bundles_post_ra>
// kernel: tpu_custom_call.1
= control target key start
LH: loop header
LB: loop body
LE: loop exit
PB: predicated region body
PF: predicated region fallthrough
CT: control target
= control target key end

     0   :  { %s1096_s0 = inlined_call_operand.hbm [shape: f32[16,147], index: 0, kind: input, shape index: {}]   ;;  %s1097_s1 = inlined_call_operand.hbm [shape: bf16[147,256], index: 1, kind: input, shape index: {}]   ;;  %s1098_s2 = inlined_call_operand.vmem [shape: f32[1,256], index: 2, kind: input, shape index: {}]   ;;  %s1099_s3 = inlined_call_operand.vmem [shape: bf16[256,128], index: 3, kind: input, shape index: {}]   ;;  %s1100_s4 = inlined_call_operand.vmem [shape: f32[1,128], index: 4, kind: input, shape index: {}]   ;;  %s1101_s5 = inlined_call_operand.vmem [shape: bf16[128,64], index: 5, kind: input, shape index: {}]   ;;  %s1102_s6 = inlined_call_operand.vmem [shape: f32[1,64], index: 6, kind: input, shape index: {}]   ;;  %s1103_s7 = inlined_call_operand.vmem [shape: bf16[64,1], index: 7, kind: input, shape index: {}]   ;;  %s1104_s8 = inlined_call_operand.<no memory space> [shape: f32[1,1], index: 8, kind: input, shape index: {}]   ;;  %s1105_s9 = inlined_call_operand.vmem [shape: f32[16,1], index: 9, kind: output, shape index: {}]  }
   0x1   :  { %v14_v0 = vstv %s1104_s8 }
   0x2   :  { %15 = vst [vmem:[#allocation2] sm:$0x1] %v14_v0 }
   0x3   :  { %16 = vsyncpa [#allocation4], 0 }
   0x4   :  { %17 = vsyncpa [#allocation6], 0  ;;  %s896_s11 = smov [#allocation3]   ;;  %s848_s15 = scalar_lea.hbm %s1096_s0, 512 }
   0x5   :  { %s23_s12 = sshll.u32 %s896_s11, 4  ;;  %p849_p0 = scmp.ne.s32.totalorder %s1096_s0, %s848_s15  ;;  %s24_s12 = int_to_ptr.vmem [resolvable:$true] %s23_s12 }
   0x6   :  { %p852_p1 = scmp.lt.u32.totalorder %s848_s15, %s1096_s0 }
   0x8   :  { %p854_p2 = pnand %p852_p1, %p849_p0 }
   0xa   :  { %857 = shalt.err (!%p854_p2)
}
   0xb   :  { %s858_s8 = scalar_lea.vmem %s24_s12, 512  ;;  %p863_p4 = scmp.lt.s32.totalorder %s24_s12, %s24_s12 }
   0xc   :  { %p859_p3 = scmp.ne.s32.totalorder %s24_s12, %s858_s8  ;;  %p864_p5 = scmp.lt.s32.totalorder %s858_s8, %s858_s8 }
   0xe   :  { %p865_p6 = por %p864_p5, %p863_p4 }
  0x10   :  { %p866_p7 = pnand %p865_p6, %p859_p3 }
  0x12   :  { %869 = shalt.err (!%p866_p7)
}
  0x13   :  { %s897_s20 = smov 256   ;;  %s898_s21 = smov 16  }
  0x14   :  { %29 = dma.hbm_to_vmem [thread:$0]  %s1096_s0, 512, %s24_s12, [#allocation4], %s897_s20, %s897_s20, %s898_s21  }
  0x15   :  { %s899_s24 = smov [#allocation5]   ;;  %s870_s28 = scalar_lea.hbm %s1097_s1, 2432 }
  0x16   :  { %s35_s25 = sshll.u32 %s899_s24, 4  ;;  %p871_p8 = scmp.ne.s32.totalorder %s1097_s1, %s870_s28  ;;  %s36_s25 = int_to_ptr.vmem [resolvable:$true] %s35_s25 }
  0x17   :  { %p874_p9 = scmp.lt.u32.totalorder %s870_s28, %s1097_s1 }
  0x19   :  { %p876_p10 = pnand %p874_p9, %p871_p8 }
  0x1b   :  { %879 = shalt.err (!%p876_p10)
}
  0x1c   :  { %s880_s13 = scalar_lea.vmem %s36_s25, 2432  ;;  %p885_p12 = scmp.lt.s32.totalorder %s36_s25, %s36_s25 }
  0x1d   :  { %p881_p11 = scmp.ne.s32.totalorder %s36_s25, %s880_s13  ;;  %p886_p13 = scmp.lt.s32.totalorder %s880_s13, %s880_s13 }
  0x1f   :  { %p887_p0 = por %p886_p13, %p885_p12 }
  0x21   :  { %p888_p1 = pnand %p887_p0, %p881_p11 }
  0x23   :  { %891 = shalt.err (!%p888_p1)
}
  0x24   :  { %s900_s0 = smov 128   ;;  %s901_s12 = smov 8  }
  0x25   :  { %41 = dma.hbm_to_vmem [thread:$0]  %s1097_s1, 2432, %s36_s25, [#allocation6], %s900_s0, %s900_s0, %s901_s12  }
  0x26   :  { %892 = dma.done.wait [#allocation4], 512  }
  0x27   :  { %893 = vsyncadd [#allocation4], 4294966784 }
  0x28   :  { %894 = dma.done.wait [#allocation6], 2432  }
  0x29   :  { %895 = vsyncadd [#allocation6], 4294964864  ;;  %v791_v1 = vld [vmem:[#allocation5 + $0x4] ss:$8 sps:$4 sm:$0xff]   ;;  %v793_v2 = vld [vmem:[#allocation5] ss:$8 sps:$4 sm:$0xff]   ;;  %v90_v50 = vlaneseq }
  0x2a   :  { %209 = vmatprep.subr.bf16.mxu0 %v791_v1  ;;  %v794_v3 = vld [vmem:[#allocation5 + $0x14] ss:$8 sps:$4 sm:$0xff]   ;;  %v796_v4 = vld [vmem:[#allocation5 + $0x10] ss:$8 sps:$4 sm:$0xff]   ;;  %v797_v5 = vld [vmem:[#allocation5 + $0x24] ss:$8 sps:$4 sm:$0xff]  }
  0x2b   :  { %210 = vmatpush1.bf16.msra.mxu0 %v793_v2  ;;  %v799_v6 = vld [vmem:[#allocation5 + $0x20] ss:$8 sps:$4 sm:$0xff]   ;;  %v800_v7 = vld [vmem:[#allocation5 + $0x34] ss:$8 sps:$4 sm:$0xff]   ;;  %v802_v8 = vld [vmem:[#allocation5 + $0x30] ss:$8 sps:$4 sm:$0xff]  }
  0x2c   :  { %211 = vmatprep.subr.bf16.mxu0 %v794_v3  ;;  %v803_v9 = vld [vmem:[#allocation5 + $0x44] ss:$8 sps:$4 sm:$0xff]   ;;  %v66_v11 = vld [vmem:[#allocation3 + $0x18] sm:$0xff]  ;;  %vm195_vm0 = vcmask 154624   ;;  %v805_v12 = vld [vmem:[#allocation5 + $0x40] ss:$8 sps:$4 sm:$0xff]  }
  0x2d   :  { %v64_v10 = vld [vmem:[#allocation3 + $0x8] sm:$0xff]  ;;  %v806_v14 = vld [vmem:[#allocation5 + $0x54] ss:$8 sps:$4 sm:$0xff]   ;;  %vm199_vm1 = vcmask 1040384   ;;  %vm200_vm2 = vcmask 1041408   ;;  %v902_v19 = vmov 65535  }
  0x2e   :  { %v68_v13 = vpack.c.bf16 %v66_v11, %v64_v10  ;;  %v820_v15 = vld [vmem:[%s1099_s3 + $0x40] sm:$0xff]   ;;  %v822_v17 = vld [vmem:[%s1099_s3 + $0x48] sm:$0xff]   ;;  %v201_v20 = vsel %vm199_vm1, 4294967295, %v902_v19  ;;  %v824_v21 = vld [vmem:[%s1099_s3 + $0x50] sm:$0xff]   ;;  %v903_v49 = vmov 0.0   ;;  %v91_v51 = vshrl.u32 %v90_v50, 7 }
  0x2f   :  { %212 = vmatpush1.bf16.msra.mxu0 %v796_v4  ;;  %v821_v16 = vld [vmem:[%s1099_s3] sm:$0xff]   ;;  %714 = vmatprep.subr.bf16.mxu1 %v820_v15  ;;  %v823_v18 = vld [vmem:[%s1099_s3 + $0x8] sm:$0xff]   ;;  %v808_v22 = vld [vmem:[#allocation5 + $0x50] ss:$8 sps:$4 sm:$0xff]   ;;  %v202_v29 = vsel %vm200_vm2, %v201_v20, 0  ;;  %vm904_vm7 = vmmov 0  }
  0x30   :  { %213 = vmatprep.subr.bf16.mxu0 %v797_v5  ;;  %681 = vmatprep.mubr.msk.bf16.mxu0 %vm195_vm0, %v68_v13  ;;  %v809_v23 = vld [vmem:[#allocation5 + $0x64] ss:$8 sps:$4 sm:$0xff]   ;;  %v811_v24 = vld [vmem:[#allocation5 + $0x60] ss:$8 sps:$4 sm:$0xff]   ;;  %v812_v26 = vld [vmem:[#allocation5 + $0x74] ss:$8 sps:$4 sm:$0xff]  }
  0x31   :  { %715 = vmatpush3.bf16.msra.mxu1 %v821_v16  ;;  %v825_v25 = vld [vmem:[%s1099_s3 + $0x10] sm:$0xff]   ;;  %v826_v27 = vld [vmem:[%s1099_s3 + $0x58] sm:$0xff]   ;;  %v828_v31 = vld [vmem:[%s1099_s3 + $0x60] sm:$0xff]   ;;  %v92_v52 = vsub.s32 0, %v91_v51  ;;  %v96_v54 = vsub.s32 1, %v91_v51  ;;  %vm607_vm12 = vcmask 523264  }
  0x32   :  { %716 = vmatprep.subr.bf16.mxu1 %v822_v17  ;;  %v87_v28 = vld [vmem:[#allocation5 + $0x90] sm:$0x33]  ;;  %v827_v30 = vld [vmem:[%s1099_s3 + $0x18] sm:$0xff]   ;;  %v815_v33 = vld [vmem:[#allocation5 + $0x84] ss:$8 sps:$4 sm:$0xff]   ;;  %vm652_vm13 = vcmask 7168  }
  0x33   :  { %214 = vmatpush1.bf16.msra.mxu0 %v799_v6  ;;  %v814_v32 = vld [vmem:[#allocation5 + $0x70] ss:$8 sps:$4 sm:$0xff]   ;;  %v829_v34 = vld [vmem:[%s1099_s3 + $0x20] sm:$0xff]   ;;  %v680_v35 = vcombine.high %v87_v28, %v87_v28  ;;  %v679_v37 = vcombine.low %v87_v28, %v87_v28  ;;  %v830_v43 = vld [vmem:[%s1099_s3 + $0x68] sm:$0xff]  }
  0x34   :  { %215 = vmatprep.subr.bf16.mxu0 %v800_v7  ;;  %v817_v36 = vld [vmem:[#allocation5 + $0x80] ss:$8 sps:$4 sm:$0xff]   ;;  %v65_v40 = vld [vmem:[#allocation3 + $0x10] sm:$0xff] }
  0x35   :  { %717 = vmatpush3.bf16.msra.mxu1 %v823_v18  ;;  %v207_v38 = vand.u32 %v680_v35, %v202_v29  ;;  %v63_v39 = vld [vmem:[#allocation3] sm:$0xff]  ;;  %v204_v41 = vand.u32 %v679_v37, %v202_v29  ;;  %v832_v45 = vld [vmem:[%s1099_s3 + $0x70] sm:$0xff]   ;;  %v834_v47 = vld [vmem:[%s1099_s3 + $0x78] sm:$0xff]  }
  0x36   :  { %718 = vmatprep.subr.bf16.mxu1 %v824_v21  ;;  %v67_v42 = vpack.c.bf16 %v65_v40, %v63_v39  ;;  %v831_v44 = vld [vmem:[%s1099_s3 + $0x28] sm:$0xff]   ;;  %v833_v46 = vld [vmem:[%s1099_s3 + $0x30] sm:$0xff]   ;;  %v835_v48 = vld [vmem:[%s1099_s3 + $0x38] sm:$0xff]  }
  0x37   :  { %216 = vmatpush1.bf16.msra.mxu0 %v802_v8  ;;  %v88_v53 = vld [vmem:[%s1098_s2] sm:$0x3]  ;;  %v838_v13 = vld [vmem:[%s1101_s5 + $0x10] sm:$0xff]   ;;  %v841_v16 = vld [vmem:[%s1101_s5 + $0x28] sm:$0xff]  }
  0x38   :  { %217 = vmatprep.subr.bf16.mxu0 %v803_v9  ;;  %v93_v55 = vrot.slane %v88_v53, %v92_v52  ;;  %v97_v56 = vrot.slane %v88_v53, %v96_v54  ;;  %v836_v11 = vld [vmem:[%s1101_s5] sm:$0xff]   ;;  %v842_v17 = vld [vmem:[%s1101_s5 + $0x30] sm:$0xff]   ;;  %v843_v18 = vld [vmem:[%s1101_s5 + $0x38] sm:$0xff]  }
  0x39   :  { %719 = vmatpush3.bf16.msra.mxu1 %v825_v25  ;;  %v840_v15 = vld [vmem:[%s1101_s5 + $0x20] sm:$0xff]   ;;  %v845_v20 = vld [vmem:[%s1103_s7 + $0x8] sm:$0xff]   ;;  %v846_v35 = vld [vmem:[%s1103_s7 + $0x10] sm:$0xff]  }
  0x3a   :  { %720 = vmatprep.subr.bf16.mxu1 %v826_v27  ;;  %v844_v19 = vld [vmem:[%s1103_s7] sm:$0xff]  }
  0x3b   :  { %218 = vmatpush1.bf16.msra.mxu0 %v805_v12  ;;  %v837_v12 = vld [vmem:[%s1101_s5 + $0x8] sm:$0xff]   ;;  %v699_v37 = vld [vmem:[%s1102_s6] ss:$0 sm:$0xff] }
  0x3c   :  { %219 = vmatprep.subr.bf16.mxu0 %v806_v14  ;;  %v839_v14 = vld [vmem:[%s1101_s5 + $0x18] sm:$0xff]  }
  0x3d   :  { %721 = vmatpush3.bf16.msra.mxu1 %v827_v30 }
  0x3e   :  { %722 = vmatprep.subr.bf16.mxu1 %v828_v31 }
  0x3f   :  { %220 = vmatpush1.bf16.msra.mxu0 %v808_v22  ;;  %v682_v22 = vld [vmem:[%s1100_s4] ss:$0 sm:$0xff] }
  0x40   :  { %221 = vmatprep.subr.bf16.mxu0 %v809_v23 }
  0x41   :  { %723 = vmatpush3.bf16.msra.mxu1 %v829_v34 }
  0x42   :  { %724 = vmatprep.subr.bf16.mxu1 %v830_v43 }
  0x43   :  { %222 = vmatpush1.bf16.msra.mxu0 %v811_v24 }
  0x44   :  { %223 = vmatprep.subr.bf16.mxu0 %v812_v26 }
  0x45   :  { %725 = vmatpush3.bf16.msra.mxu1 %v831_v44 }
  0x46   :  { %726 = vmatprep.subr.bf16.mxu1 %v832_v45 }
  0x47   :  { %224 = vmatpush1.bf16.msra.mxu0 %v814_v32 }
  0x48   :  { %225 = vmatprep.subr.bf16.mxu0 %v815_v33 }
  0x49   :  { %727 = vmatpush3.bf16.msra.mxu1 %v833_v46 }
  0x4a   :  { %728 = vmatprep.subr.bf16.mxu1 %v834_v47 }
  0x4b   :  { %226 = vmatpush1.bf16.msra.mxu0 %v817_v36  ;;  %v847_v36 = vld [vmem:[%s1103_s7 + $0x18] sm:$0xff]  }
  0x4c   :  { %227 = vmatprep.subr.bf16.mxu0 %v207_v38 }
  0x4d   :  { %729 = vmatpush3.bf16.msra.mxu1 %v835_v48 }
  0x4e   :  { %750 = vmatprep.subr.bf16.mxu1 %v903_v49 }
  0x4f   :  { %228 = vmatpush1.bf16.msra.mxu0 %v204_v41 }
  0x50   :  { %770 = vmatprep.subr.bf16.mxu0 %v903_v49 }
  0x52   :  { %242 = vmatmul.mubr.bf16.vlgmr.msra.gmra.mrb[0].mxu0 %v67_v42 }
  0x53   :  { %778 = vmatprep.mubr.msk.bf16.mxu0 %vm904_vm7, %v903_v49  ;;  %771 = vmatpush3.bf16.msra.mxu0 %v844_v19 }
  0x54   :  { %772 = vmatprep.subr.bf16.mxu0 %v903_v49 }
  0x57   :  { %773 = vmatpush3.bf16.msra.mxu0 %v845_v20 }
  0x58   :  { %774 = vmatprep.subr.bf16.mxu0 %v903_v49 }
  0x5b   :  { %775 = vmatpush3.bf16.msra.mxu0 %v846_v35 }
  0x5c   :  { %776 = vmatprep.subr.bf16.mxu0 %v903_v49 }
  0x5f   :  { %777 = vmatpush3.bf16.msra.mxu0 %v847_v36 }
 0x125   :  { %v243_v57 = vpop.f32.mrb[0].mxu0 }
 0x126   :  { %v244_v58 = vadd.f32 %v243_v57, %v93_v55  ;;  %v245_v59 = vpop.f32.mrb[1].mxu0 }
 0x127   :  { %v246_v60 = vadd.f32 %v245_v59, %v97_v56  ;;  %v247_v61 = vpop.f32.mrb[2].mxu0 }
 0x128   :  { %v256_v62 = vmul.f32 0.2, %v244_v58  ;;  %v248_v63 = vadd.f32 %v247_v61, %v93_v55  ;;  %v249_v0 = vpop.f32.mrb[3].mxu0  ;;  %vm252_vm3 = vcmp.gt.f32.partialorder %v244_v58, 0.0 }
 0x129   :  { %v257_v1 = vmul.f32 0.2, %v246_v60  ;;  %v250_v2 = vadd.f32 %v249_v0, %v97_v56  ;;  %vm253_vm5 = vcmp.gt.f32.partialorder %v246_v60, 0.0 }
 0x12a   :  { %vm254_vm4 = vcmp.gt.f32.partialorder %v248_v63, 0.0  ;;  %v258_v3 = vmul.f32 0.2, %v248_v63  ;;  %v260_v5 = vsel %vm252_vm3, %v244_v58, %v256_v62 }
 0x12b   :  { %v259_v4 = vmul.f32 0.2, %v250_v2  ;;  %vm255_vm6 = vcmp.gt.f32.partialorder %v250_v2, 0.0  ;;  %v261_v7 = vsel %vm253_vm5, %v246_v60, %v257_v1 }
 0x12c   :  { %v262_v6 = vsel %vm254_vm4, %v248_v63, %v258_v3 }
 0x12d   :  { %v263_v8 = vsel %vm255_vm6, %v250_v2, %v259_v4  ;;  %v264_v9 = vpack.c.bf16 %v262_v6, %v260_v5 }
 0x12e   :  { %v265_v10 = vpack.c.bf16 %v263_v8, %v261_v7 }
 0x130   :  { %433 = vmatprep.mubr.bf16.mxu1 %v265_v10 }
 0x131   :  { %434 = vmatmul.mubr.bf16.vlgmr.msra.gmra.mrb[0].mxu1 %v264_v9 }
 0x132   :  { %751 = vmatpush3.bf16.msra.mxu1 %v836_v11  ;;  %766 = vmatprep.mubr.msk.bf16.mxu1 %vm904_vm7, %v903_v49 }
 0x133   :  { %752 = vmatprep.subr.bf16.mxu1 %v903_v49 }
 0x136   :  { %753 = vmatpush3.bf16.msra.mxu1 %v837_v12 }
 0x137   :  { %754 = vmatprep.subr.bf16.mxu1 %v903_v49 }
 0x13a   :  { %755 = vmatpush3.bf16.msra.mxu1 %v838_v13 }
 0x13b   :  { %756 = vmatprep.subr.bf16.mxu1 %v903_v49 }
 0x13e   :  { %757 = vmatpush3.bf16.msra.mxu1 %v839_v14 }
 0x13f   :  { %758 = vmatprep.subr.bf16.mxu1 %v903_v49 }
 0x142   :  { %759 = vmatpush3.bf16.msra.mxu1 %v840_v15 }
 0x143   :  { %760 = vmatprep.subr.bf16.mxu1 %v903_v49 }
 0x146   :  { %761 = vmatpush3.bf16.msra.mxu1 %v841_v16 }
 0x147   :  { %762 = vmatprep.subr.bf16.mxu1 %v903_v49 }
 0x14a   :  { %763 = vmatpush3.bf16.msra.mxu1 %v842_v17 }
 0x14b   :  { %764 = vmatprep.subr.bf16.mxu1 %v903_v49  ;;  %v708_v49 = vld [vmem:[#allocation2] ss:$0 sm:$0xff] }
 0x14e   :  { %765 = vmatpush3.bf16.msra.mxu1 %v843_v18 }
 0x204   :  { %v730_v21 = vpop.f32.mrb[0].mxu1 }
 0x205   :  { %v731_v23 = vpop.f32.mrb[1].mxu1 }
 0x206   :  { %v732_v24 = vadd.f32 %v731_v23, %v730_v21  ;;  %v733_v25 = vpop.f32.mrb[2].mxu1 }
 0x207   :  { %v734_v26 = vpop.f32.mrb[3].mxu1 }
 0x208   :  { %v436_v27 = vadd.f32 %v732_v24, %v682_v22  ;;  %v735_v28 = vadd.f32 %v734_v26, %v733_v25 }
 0x20a   :  { %v444_v29 = vmul.f32 0.2, %v436_v27  ;;  %v439_v30 = vadd.f32 %v735_v28, %v682_v22  ;;  %vm442_vm8 = vcmp.gt.f32.partialorder %v436_v27, 0.0 }
 0x20c   :  { %vm443_vm9 = vcmp.gt.f32.partialorder %v439_v30, 0.0  ;;  %v445_v31 = vmul.f32 0.2, %v439_v30  ;;  %v446_v32 = vsel %vm442_vm8, %v436_v27, %v444_v29 }
 0x20e   :  { %v447_v33 = vsel %vm443_vm9, %v439_v30, %v445_v31 }
 0x20f   :  { %v448_v34 = vpack.c.bf16 %v447_v33, %v446_v32 }
 0x211   :  { %767 = vmatmul.mubr.bf16.vlgmr.msra.gmra.mrb[4].mxu1 %v448_v34 }
 0x2e4   :  { %v554_v38 = vpop.f32.mrb[4].mxu1 }
 0x2e5   :  { %v555_v39 = vadd.f32 %v699_v37, %v554_v38  ;;  %v768_v40 = vpop.f32.mrb[5].mxu1 }
 0x2e6   :  { %v557_v41 = vpop.f32.mrb[6].mxu1 }
 0x2e7   :  { %v563_v42 = vmul.f32 0.2, %v555_v39  ;;  %v558_v43 = vadd.f32 %v699_v37, %v557_v41  ;;  %v769_v44 = vpop.f32.mrb[7].mxu1  ;;  %vm561_vm10 = vcmp.gt.f32.partialorder %v555_v39, 0.0 }
 0x2e9   :  { %vm562_vm11 = vcmp.gt.f32.partialorder %v558_v43, 0.0  ;;  %v564_v45 = vmul.f32 0.2, %v558_v43  ;;  %v565_v46 = vsel %vm561_vm10, %v555_v39, %v563_v42 }
 0x2eb   :  { %v566_v47 = vsel %vm562_vm11, %v558_v43, %v564_v45 }
 0x2ec   :  { %v567_v48 = vpack.c.bf16 %v566_v47, %v565_v46 }
 0x2ee   :  { %779 = vmatmul.mubr.msk.bf16.vlgmr.msra.gmra.mrb[4].mxu0 %vm607_vm12, %v567_v48 }
 0x3c1   :  { %v645_v50 = vpop.f32.mrb[4].mxu0 }
 0x3c2   :  { %v646_v51 = vadd.f32 %v708_v49, %v645_v50  ;;  %v780_v52 = vpop.f32.mrb[5].mxu0 }
 0x3c3   :  { %v648_v53 = vpop.f32.mrb[6].mxu0 }
 0x3c4   :  { %653 = vst.msk [vmem:[%s1105_s9] sm:$0xff] %vm652_vm13, %v646_v51  ;;  %v649_v54 = vadd.f32 %v708_v49, %v648_v53  ;;  %v781_v55 = vpop.f32.mrb[7].mxu0 }
 0x3c6   :  { %654 = vst.msk [vmem:[%s1105_s9 + $0x8] sm:$0xff] %vm652_vm13, %v649_v54 }
 0x3c7   :  { %659 = vsyncpa [#allocation4], 1 }
 0x3c8   :  { %660 = vsyncpa [#allocation6], 1 }

</bundles_post_ra>
